<compile_context>
chip_gen: v7x
topology: tpu7x:2x2x1
jax: 0.10.0
libtpu: 0.0.40
codegen_flags: <defaults>
</compile_context>

<pallas_src>
import functools

import jax
import jax.numpy as jnp
from jax.experimental import pallas as pl
from jax.experimental.pallas import tpu as pltpu


def _round_up(x: int, m: int) -> int:
    return ((x + m - 1) // m) * m


def _lora_linear_kernel(x_ref, w_ref, a_ref, b_ref, bias_ref, o_ref,
                        acc_ref, xa_ref):
    """One (i, j) output tile, accumulated over the K grid axis.

    x_ref:    (tm, tk)   activation tile
    w_ref:    (tn, tk)   weight tile (stored (out, in) like nn.Linear)
    a_ref:    (tk, Rp)   alpha * A, K-tiled (rank zero-padded to Rp lanes)
    b_ref:    (Rp, tn)   B tile
    bias_ref: (1, tn)
    o_ref:    (tm, tn)
    acc_ref:  (tm, tn) f32 scratch — main matmul accumulator
    xa_ref:   (tm, Rp) f32 scratch — running x @ (alpha*A)
    """
    k = pl.program_id(2)

    @pl.when(k == 0)
    def _():
        acc_ref[...] = jnp.zeros_like(acc_ref)
        xa_ref[...] = jnp.zeros_like(xa_ref)

    x = x_ref[...]

    # x @ W.T without transposing W: contract dim 1 of x with dim 1 of W.
    acc_ref[...] += jax.lax.dot_general(
        x, w_ref[...],
        dimension_numbers=(((1,), (1,)), ((), ())),
        preferred_element_type=jnp.float32,
    )

    # Running LoRA projection xa += x_tile @ (alpha * A)_tile  (tiny R dim).
    xa_ref[...] += jnp.dot(x, a_ref[...], preferred_element_type=jnp.float32)

    @pl.when(k == pl.num_programs(2) - 1)
    def _():
        lora = jnp.dot(xa_ref[...].astype(b_ref.dtype), b_ref[...],
                       preferred_element_type=jnp.float32)        # (tm, tn)
        y = acc_ref[...] + lora + bias_ref[...].astype(jnp.float32)
        o_ref[...] = y.astype(o_ref.dtype)


@functools.partial(jax.jit, static_argnames=("alpha",))
def linear_with_lora_merged(x, W, A, B, bias, alpha):
    """y = x @ (W + alpha*(A@B).T).T + bias.

    x: (M, K), W: (N, K), A: (K, R), B: (R, N), bias: (N,) -> (M, N).
    """
    M, K = x.shape
    N, _ = W.shape
    R = A.shape[1]

    # Fold alpha into A once, outside the kernel.
    A_scaled = (alpha * A).astype(A.dtype)

    # Tile sizes: sublane-aligned M, lane-dense (multiple of 128) N/K/R.
    # Capped so double-buffered f32 tiles stay well inside v7x's 64 MiB VMEM.
    tm = min(256, _round_up(M, 8))
    tn = min(256, _round_up(N, 128))
    tk = min(512, _round_up(K, 128))
    Rp = _round_up(R, 128)

    Mp, Np, Kp = _round_up(M, tm), _round_up(N, tn), _round_up(K, tk)

    # Zero padding is exact: padded K contributes 0 to every dot product and
    # padded N rows/cols are sliced off below.
    xp = jnp.zeros((Mp, Kp), x.dtype).at[:M, :K].set(x)
    Wp = jnp.zeros((Np, Kp), W.dtype).at[:N, :K].set(W)
    Ap = jnp.zeros((Kp, Rp), A.dtype).at[:K, :R].set(A_scaled)
    Bp = jnp.zeros((Rp, Np), B.dtype).at[:R, :N].set(B)
    biasp = jnp.zeros((1, Np), bias.dtype).at[0, :N].set(bias)

    grid = (Mp // tm, Np // tn, Kp // tk)

    out = pl.pallas_call(
        _lora_linear_kernel,
        out_shape=jax.ShapeDtypeStruct((Mp, Np), x.dtype),
        grid_spec=pltpu.PrefetchScalarGridSpec(
            num_scalar_prefetch=0,
            grid=grid,
            in_specs=[
                pl.BlockSpec((tm, tk), lambda i, j, k: (i, k)),   # x
                pl.BlockSpec((tn, tk), lambda i, j, k: (j, k)),   # W (out, in)
                pl.BlockSpec((tk, Rp), lambda i, j, k: (k, 0)),   # alpha*A
                pl.BlockSpec((Rp, tn), lambda i, j, k: (0, j)),   # B
                pl.BlockSpec((1, tn), lambda i, j, k: (0, j)),    # bias
            ],
            out_specs=pl.BlockSpec((tm, tn), lambda i, j, k: (i, j)),
            scratch_shapes=[
                pltpu.VMEM((tm, tn), jnp.float32),   # main accumulator
                pltpu.VMEM((tm, Rp), jnp.float32),   # x @ (alpha*A) accumulator
            ],
        ),
        compiler_params=pltpu.CompilerParams(
            dimension_semantics=("parallel", "parallel", "arbitrary"),
            vmem_limit_bytes=48 << 20,   # safe on v7x (64 MiB), ample on v5e/v6e
        ),
    )(xp, Wp, Ap, Bp, biasp)

    return out[:M, :N]


def _reference(x, W, A, B, bias, alpha):
    # Exact PyTorch forward: merged weights, then F.linear.
    lora_w = alpha * (A @ B)          # (in, out)
    merged = W + lora_w.T             # (out, in)
    return x @ merged.T + bias        # (batch, out)


if __name__ == "__main__":
    key = jax.random.PRNGKey(0)

    # --- Case 1: small shapes matching the module's toy configuration. ---
    batch, in_features, out_features, rank = 8, 32, 64, 4
    alpha = 2.0
    kx, kw, ka, kb, kbias = jax.random.split(key, 5)
    x = jax.random.normal(kx, (batch, in_features), dtype=jnp.float32)
    W = jax.random.normal(kw, (out_features, in_features), dtype=jnp.float32) * 0.05
    bias = jax.random.normal(kbias, (out_features,), dtype=jnp.float32) * 0.05
    std = 1.0 / jnp.sqrt(jnp.float32(rank))
    A = jax.random.normal(ka, (in_features, rank), dtype=jnp.float32) * std
    B = jax.random.normal(kb, (rank, out_features), dtype=jnp.float32) * 0.02

    y = jax.block_until_ready(linear_with_lora_merged(x, W, A, B, bias, alpha))
    y_ref = _reference(x, W, A, B, bias, alpha)
    assert y.shape == (batch, out_features)
    assert jnp.allclose(y, y_ref, atol=1e-4, rtol=1e-4), "small-case mismatch"

    # --- Case 2: larger shapes to exercise the tiled grid (multi N/K tiles). ---
    M2, K2, N2, R2 = 256, 1024, 384, 8
    k2 = jax.random.PRNGKey(1)
    kx, kw, ka, kb, kbias = jax.random.split(k2, 5)
    x2 = jax.random.normal(kx, (M2, K2), dtype=jnp.float32)
    W2 = jax.random.normal(kw, (N2, K2), dtype=jnp.float32) * 0.05
    bias2 = jax.random.normal(kbias, (N2,), dtype=jnp.float32) * 0.05
    A2 = jax.random.normal(ka, (K2, R2), dtype=jnp.float32) / jnp.sqrt(jnp.float32(R2))
    B2 = jax.random.normal(kb, (R2, N2), dtype=jnp.float32) * 0.02

    y2 = jax.block_until_ready(linear_with_lora_merged(x2, W2, A2, B2, bias2, 2.0))
    y2_ref = _reference(x2, W2, A2, B2, bias2, 2.0)
    assert y2.shape == (M2, N2)
    assert jnp.allclose(y2, y2_ref, atol=1e-3, rtol=1e-4), "large-case mismatch"

    print("KERNEL_OK")
</pallas_src>

<mosaic_0001>
module attributes {stable_mosaic.version = 11 : i64} {
  func.func @_lora_linear_kernel(%arg0: i32, %arg1: i32, %arg2: i32, %arg3: memref<8x128xf32, #tpu.memory_space<vmem>>, %arg4: memref<128x128xf32, #tpu.memory_space<vmem>>, %arg5: memref<128x128xf32, #tpu.memory_space<vmem>>, %arg6: memref<128x128xf32, #tpu.memory_space<vmem>>, %arg7: memref<1x128xf32, #tpu.memory_space<vmem>>, %arg8: memref<8x128xf32, #tpu.memory_space<vmem>>, %arg9: memref<8x128xf32, #tpu.memory_space<vmem>>, %arg10: memref<8x128xf32, #tpu.memory_space<vmem>>) attributes {dimension_semantics = [#tpu.dimension_semantics<parallel>, #tpu.dimension_semantics<parallel>, #tpu.dimension_semantics<arbitrary>], iteration_bounds = array<i64: 1, 1, 1>, scalar_prefetch = 0 : i64, scratch_operands = 2 : i64, tpu.core_type = #tpu.core_type<tc>, window_params = [{transform_indices = @transform_0, window_bounds = array<i64: 8, 128>}, {transform_indices = @transform_1, window_bounds = array<i64: 128, 128>}, {transform_indices = @transform_2, window_bounds = array<i64: 128, 128>}, {transform_indices = @transform_3, window_bounds = array<i64: 128, 128>}, {transform_indices = @transform_4, window_bounds = array<i64: 1, 128>}, {transform_indices = @transform_5, window_bounds = array<i64: 8, 128>}]} {
    %c0_i32 = arith.constant 0 : i32
    %0 = arith.cmpi eq, %arg2, %c0_i32 : i32
    %1 = arith.extui %0 : i1 to i32
    %c0_i32_0 = arith.constant 0 : i32
    %2 = arith.cmpi ne, %1, %c0_i32_0 : i32
    scf.if %2 {
      %cst_17 = arith.constant 0.000000e+00 : f32
      %17 = vector.broadcast %cst_17 : f32 to vector<8x128xf32>
      %c0_18 = arith.constant 0 : index
      %c0_19 = arith.constant 0 : index
      %18 = vector.load %arg9[%c0_18, %c0_19] : memref<8x128xf32, #tpu.memory_space<vmem>>, vector<8x128xf32>
      tpu.vector_store %arg9[%c0_18, %c0_19], %17 {strides = array<i32>} : memref<8x128xf32, #tpu.memory_space<vmem>>, vector<8x128xf32>,
      %cst_20 = arith.constant 0.000000e+00 : f32
      %19 = vector.broadcast %cst_20 : f32 to vector<8x128xf32>
      %c0_21 = arith.constant 0 : index
      %c0_22 = arith.constant 0 : index
      %20 = vector.load %arg10[%c0_21, %c0_22] : memref<8x128xf32, #tpu.memory_space<vmem>>, vector<8x128xf32>
      tpu.vector_store %arg10[%c0_21, %c0_22], %19 {strides = array<i32>} : memref<8x128xf32, #tpu.memory_space<vmem>>, vector<8x128xf32>,
    } else {
    }
    %c0 = arith.constant 0 : index
    %c0_1 = arith.constant 0 : index
    %3 = vector.load %arg3[%c0, %c0_1] : memref<8x128xf32, #tpu.memory_space<vmem>>, vector<8x128xf32>
    %c0_2 = arith.constant 0 : index
    %c0_3 = arith.constant 0 : index
    %4 = vector.load %arg9[%c0_2, %c0_3] : memref<8x128xf32, #tpu.memory_space<vmem>>, vector<8x128xf32>
    %c0_4 = arith.constant 0 : index
    %c0_5 = arith.constant 0 : index
    %5 = vector.load %arg4[%c0_4, %c0_5] : memref<128x128xf32, #tpu.memory_space<vmem>>, vector<128x128xf32>
    %cst = arith.constant dense<0.000000e+00> : vector<8x128xf32>
    %6 = tpu.matmul %3, %5, %cst {dimension_numbers = #tpu.dot_dimension_numbers<[1], [1], [0], [0], [0, 0, 1, 0], [], []>} : vector<8x128xf32>, vector<128x128xf32>, vector<8x128xf32> -> vector<8x128xf32>
    %7 = arith.addf %4, %6 : vector<8x128xf32>
    %c0_6 = arith.constant 0 : index
    %c0_7 = arith.constant 0 : index
    %8 = vector.load %arg9[%c0_6, %c0_7] : memref<8x128xf32, #tpu.memory_space<vmem>>, vector<8x128xf32>
    tpu.vector_store %arg9[%c0_6, %c0_7], %7 {strides = array<i32>} : memref<8x128xf32, #tpu.memory_space<vmem>>, vector<8x128xf32>,
    %c0_8 = arith.constant 0 : index
    %c0_9 = arith.constant 0 : index
    %9 = vector.load %arg10[%c0_8, %c0_9] : memref<8x128xf32, #tpu.memory_space<vmem>>, vector<8x128xf32>
    %c0_10 = arith.constant 0 : index
    %c0_11 = arith.constant 0 : index
    %10 = vector.load %arg5[%c0_10, %c0_11] : memref<128x128xf32, #tpu.memory_space<vmem>>, vector<128x128xf32>
    %cst_12 = arith.constant dense<0.000000e+00> : vector<8x128xf32>
    %11 = tpu.matmul %3, %10, %cst_12 {dimension_numbers = #tpu.dot_dimension_numbers<[1], [0], [0], [1], [0, 0, 1, 1], [], []>} : vector<8x128xf32>, vector<128x128xf32>, vector<8x128xf32> -> vector<8x128xf32>
    %12 = arith.addf %9, %11 : vector<8x128xf32>
    %c0_13 = arith.constant 0 : index
    %c0_14 = arith.constant 0 : index
    %13 = vector.load %arg10[%c0_13, %c0_14] : memref<8x128xf32, #tpu.memory_space<vmem>>, vector<8x128xf32>
    tpu.vector_store %arg10[%c0_13, %c0_14], %12 {strides = array<i32>} : memref<8x128xf32, #tpu.memory_space<vmem>>, vector<8x128xf32>,
    %c0_i32_15 = arith.constant 0 : i32
    %14 = arith.cmpi eq, %arg2, %c0_i32_15 : i32
    %15 = arith.extui %14 : i1 to i32
    %c0_i32_16 = arith.constant 0 : i32
    %16 = arith.cmpi ne, %15, %c0_i32_16 : i32
    scf.if %16 {
      %c0_17 = arith.constant 0 : index
      %c0_18 = arith.constant 0 : index
      %17 = vector.load %arg10[%c0_17, %c0_18] : memref<8x128xf32, #tpu.memory_space<vmem>>, vector<8x128xf32>
      %c0_19 = arith.constant 0 : index
      %c0_20 = arith.constant 0 : index
      %18 = vector.load %arg6[%c0_19, %c0_20] : memref<128x128xf32, #tpu.memory_space<vmem>>, vector<128x128xf32>
      %cst_21 = arith.constant dense<0.000000e+00> : vector<8x128xf32>
      %19 = tpu.matmul %17, %18, %cst_21 {dimension_numbers = #tpu.dot_dimension_numbers<[1], [0], [0], [1], [0, 0, 1, 1], [], []>} : vector<8x128xf32>, vector<128x128xf32>, vector<8x128xf32> -> vector<8x128xf32>
      %c0_22 = arith.constant 0 : index
      %c0_23 = arith.constant 0 : index
      %20 = vector.load %arg9[%c0_22, %c0_23] : memref<8x128xf32, #tpu.memory_space<vmem>>, vector<8x128xf32>
      %21 = arith.addf %20, %19 : vector<8x128xf32>
      %c0_24 = arith.constant 0 : index
      %c0_25 = arith.constant 0 : index
      %22 = vector.load %arg7[%c0_24, %c0_25] : memref<1x128xf32, #tpu.memory_space<vmem>>, vector<1x128xf32>
      %23 = vector.broadcast %22 : vector<1x128xf32> to vector<8x128xf32>
      %24 = arith.addf %21, %23 : vector<8x128xf32>
      %c0_26 = arith.constant 0 : index
      %c0_27 = arith.constant 0 : index
      %25 = vector.load %arg8[%c0_26, %c0_27] : memref<8x128xf32, #tpu.memory_space<vmem>>, vector<8x128xf32>
      tpu.vector_store %arg8[%c0_26, %c0_27], %24 {strides = array<i32>} : memref<8x128xf32, #tpu.memory_space<vmem>>, vector<8x128xf32>,
    } else {
    }
    return
  }
  func.func @transform_0(%arg0: i32, %arg1: i32, %arg2: i32) -> (i32, i32) {
    %c0_i32 = arith.constant 0 : i32
    return %arg0, %arg2 : i32, i32
  }
  func.func @transform_1(%arg0: i32, %arg1: i32, %arg2: i32) -> (i32, i32) {
    %c0_i32 = arith.constant 0 : i32
    return %arg1, %arg2 : i32, i32
  }
  func.func @transform_2(%arg0: i32, %arg1: i32, %arg2: i32) -> (i32, i32) {
    %c0_i32 = arith.constant 0 : i32
    %c0_i32_0 = arith.constant 0 : i32
    return %arg2, %c0_i32 : i32, i32
  }
  func.func @transform_3(%arg0: i32, %arg1: i32, %arg2: i32) -> (i32, i32) {
    %c0_i32 = arith.constant 0 : i32
    %c0_i32_0 = arith.constant 0 : i32
    return %c0_i32, %arg1 : i32, i32
  }
  func.func @transform_4(%arg0: i32, %arg1: i32, %arg2: i32) -> (i32, i32) {
    %c0_i32 = arith.constant 0 : i32
    %c0_i32_0 = arith.constant 0 : i32
    return %c0_i32, %arg1 : i32, i32
  }
  func.func @transform_5(%arg0: i32, %arg1: i32, %arg2: i32) -> (i32, i32) {
    %c0_i32 = arith.constant 0 : i32
    return %arg0, %arg1 : i32, i32
  }
}

</mosaic_0001>

<bundles_post_ra>
// kernel: linear_with_lora_merged.1
= control target key start
LH: loop header
LB: loop body
LE: loop exit
PB: predicated region body
PF: predicated region fallthrough
CT: control target
= control target key end

     0   :  { %v578_v3 = vmov 0.0|0.0   ;;  %vm579_vm0 = vmmov 0   ;;  %v580_v6 = vmov 0.0   ;;  %s804_s0 = inlined_call_operand.vmem [shape: f32[8,128], index: 0, kind: input, shape index: {}]   ;;  %s805_s1 = inlined_call_operand.vmem [shape: f32[128,128], index: 1, kind: input, shape index: {}]   ;;  %s806_s2 = inlined_call_operand.vmem [shape: f32[128,128], index: 2, kind: input, shape index: {}]   ;;  %s807_s3 = inlined_call_operand.vmem [shape: f32[128,128], index: 3, kind: input, shape index: {}]   ;;  %s808_s4 = inlined_call_operand.vmem [shape: f32[1,128], index: 4, kind: input, shape index: {}]   ;;  %s809_s5 = inlined_call_operand.hbm [shape: f32[8,128], index: 5, kind: output, shape index: {}]  }
   0x1   :  { %v118_v0 = vld [vmem:[%s806_s2] sm:$0xff]  ;;  %v119_v1 = vld [vmem:[%s806_s2 + $0x8] sm:$0xff]  ;;  %v120_v2 = vld [vmem:[%s806_s2 + $0x10] sm:$0xff]  ;;  %502 = vmatprep.subr.bf16.mxu1 %v578_v3  ;;  %440 = vmatprep.mubr.msk.f32.mxu1 %vm579_vm0, %v580_v6 }
   0x2   :  { %v503_v4 = vpack.c.bf16 %v119_v1, %v118_v0  ;;  %v121_v5 = vld [vmem:[%s806_s2 + $0x18] sm:$0xff]  ;;  %478 = vmatprep.subr.bf16.mxu0 %v578_v3  ;;  %405 = vmatprep.mubr.msk.f32.mxu0 %vm579_vm0, %v580_v6  ;;  %v122_v8 = vld [vmem:[%s806_s2 + $0x20] sm:$0xff]  ;;  %v123_v9 = vld [vmem:[%s806_s2 + $0x28] sm:$0xff] }
   0x3   :  { %v506_v7 = vpack.c.bf16 %v121_v5, %v120_v2  ;;  %v29_v10 = vld [vmem:[%s805_s1] sm:$0xff]  ;;  %v30_v11 = vld [vmem:[%s805_s1 + $0x8] sm:$0xff]  ;;  %v509_v12 = vpack.c.bf16 %v123_v9, %v122_v8  ;;  %v124_v14 = vld [vmem:[%s806_s2 + $0x30] sm:$0xff] }
   0x4   :  { %504 = vmatpush3.bf16.msra.mxu1 %v503_v4  ;;  %v479_v13 = vpack.c.bf16 %v30_v11, %v29_v10  ;;  %v125_v15 = vld [vmem:[%s806_s2 + $0x38] sm:$0xff]  ;;  %v31_v16 = vld [vmem:[%s805_s1 + $0x10] sm:$0xff]  ;;  %v126_v19 = vld [vmem:[%s806_s2 + $0x40] sm:$0xff] }
   0x5   :  { %505 = vmatprep.subr.bf16.mxu1 %v578_v3  ;;  %v32_v17 = vld [vmem:[%s805_s1 + $0x18] sm:$0xff]  ;;  %v512_v18 = vpack.c.bf16 %v125_v15, %v124_v14  ;;  %v127_v20 = vld [vmem:[%s806_s2 + $0x48] sm:$0xff]  ;;  %v128_v23 = vld [vmem:[%s806_s2 + $0x50] sm:$0xff] }
   0x6   :  { %480 = vmatpush3.bf16.xpose.msra.mxu0 %v479_v13  ;;  %v482_v21 = vpack.c.bf16 %v32_v17, %v31_v16  ;;  %v515_v22 = vpack.c.bf16 %v127_v20, %v126_v19  ;;  %v129_v24 = vld [vmem:[%s806_s2 + $0x58] sm:$0xff] }
   0x7   :  { %481 = vmatprep.subr.bf16.mxu0 %v578_v3 }
   0x8   :  { %507 = vmatpush3.bf16.msra.mxu1 %v506_v7 }
   0x9   :  { %508 = vmatprep.subr.bf16.mxu1 %v578_v3 }
   0xc   :  { %510 = vmatpush3.bf16.msra.mxu1 %v509_v12 }
   0xd   :  { %511 = vmatprep.subr.bf16.mxu1 %v578_v3 }
  0x10   :  { %513 = vmatpush3.bf16.msra.mxu1 %v512_v18 }
  0x11   :  { %514 = vmatprep.subr.bf16.mxu1 %v578_v3 }
  0x12   :  { %10 = vsyncpa [#allocation5], 0  ;;  %483 = vmatpush3.bf16.xpose.msra.mxu0 %v482_v21  ;;  %v33_v25 = vld [vmem:[%s805_s1 + $0x20] sm:$0xff]  ;;  %v34_v26 = vld [vmem:[%s805_s1 + $0x28] sm:$0xff]  ;;  %v518_v27 = vpack.c.bf16 %v129_v24, %v128_v23  ;;  %s581_s13 = smov [#allocation4]  }
  0x13   :  { %484 = vmatprep.subr.bf16.mxu0 %v578_v3  ;;  %v130_v28 = vld [vmem:[%s806_s2 + $0x60] sm:$0xff]  ;;  %v131_v29 = vld [vmem:[%s806_s2 + $0x68] sm:$0xff]  ;;  %v485_v30 = vpack.c.bf16 %v34_v26, %v33_v25  ;;  %v132_v32 = vld [vmem:[%s806_s2 + $0x70] sm:$0xff] }
  0x14   :  { %516 = vmatpush3.bf16.msra.mxu1 %v515_v22  ;;  %v521_v31 = vpack.c.bf16 %v131_v29, %v130_v28  ;;  %v133_v33 = vld [vmem:[%s806_s2 + $0x78] sm:$0xff]  ;;  %v35_v34 = vld [vmem:[%s805_s1 + $0x30] sm:$0xff]  ;;  %v210_v37 = vld [vmem:[%s807_s3] sm:$0xff] }
  0x15   :  { %517 = vmatprep.subr.bf16.mxu1 %v578_v3  ;;  %v36_v35 = vld [vmem:[%s805_s1 + $0x38] sm:$0xff]  ;;  %v524_v36 = vpack.c.bf16 %v133_v33, %v132_v32  ;;  %v211_v38 = vld [vmem:[%s807_s3 + $0x8] sm:$0xff]  ;;  %v27_v40 = vld [vmem:[%s804_s0] sm:$0xff] }
  0x16   :  { %v488_v39 = vpack.c.bf16 %v36_v35, %v35_v34  ;;  %v527_v41 = vpack.c.bf16 %v211_v38, %v210_v37  ;;  %v212_v42 = vld [vmem:[%s807_s3 + $0x10] sm:$0xff]  ;;  %v213_v43 = vld [vmem:[%s807_s3 + $0x18] sm:$0xff]  ;;  %v37_v44 = vld [vmem:[%s805_s1 + $0x40] sm:$0xff] }
  0x17   :  { %v38_v45 = vld [vmem:[%s805_s1 + $0x48] sm:$0xff]  ;;  %v530_v46 = vpack.c.bf16 %v213_v43, %v212_v42  ;;  %v214_v47 = vld [vmem:[%s807_s3 + $0x20] sm:$0xff]  ;;  %v216_v51 = vld [vmem:[%s807_s3 + $0x30] sm:$0xff] }
  0x18   :  { %519 = vmatpush3.bf16.msra.mxu1 %v518_v27  ;;  %v215_v48 = vld [vmem:[%s807_s3 + $0x28] sm:$0xff]  ;;  %v491_v49 = vpack.c.bf16 %v38_v45, %v37_v44  ;;  %v217_v52 = vld [vmem:[%s807_s3 + $0x38] sm:$0xff]  ;;  %v39_v53 = vld [vmem:[%s805_s1 + $0x50] sm:$0xff] }
  0x19   :  { %520 = vmatprep.subr.bf16.mxu1 %v578_v3  ;;  %v533_v50 = vpack.c.bf16 %v215_v48, %v214_v47  ;;  %v40_v54 = vld [vmem:[%s805_s1 + $0x58] sm:$0xff]  ;;  %v536_v55 = vpack.c.bf16 %v217_v52, %v216_v51  ;;  %v218_v56 = vld [vmem:[%s807_s3 + $0x40] sm:$0xff]  ;;  %v219_v57 = vld [vmem:[%s807_s3 + $0x48] sm:$0xff] }
  0x1a   :  { %486 = vmatpush3.bf16.xpose.msra.mxu0 %v485_v30  ;;  %v494_v58 = vpack.c.bf16 %v40_v54, %v39_v53  ;;  %v539_v59 = vpack.c.bf16 %v219_v57, %v218_v56  ;;  %v220_v60 = vld [vmem:[%s807_s3 + $0x50] sm:$0xff]  ;;  %v221_v61 = vld [vmem:[%s807_s3 + $0x58] sm:$0xff]  ;;  %v41_v62 = vld [vmem:[%s805_s1 + $0x60] sm:$0xff] }
  0x1b   :  { %487 = vmatprep.subr.bf16.mxu0 %v578_v3  ;;  %v42_v63 = vld [vmem:[%s805_s1 + $0x68] sm:$0xff]  ;;  %v542_v0 = vpack.c.bf16 %v221_v61, %v220_v60  ;;  %v222_v1 = vld [vmem:[%s807_s3 + $0x60] sm:$0xff]  ;;  %v225_v7 = vld [vmem:[%s807_s3 + $0x78] sm:$0xff] }
  0x1c   :  { %522 = vmatpush3.bf16.msra.mxu1 %v521_v31  ;;  %v223_v2 = vld [vmem:[%s807_s3 + $0x68] sm:$0xff]  ;;  %v497_v4 = vpack.c.bf16 %v42_v63, %v41_v62  ;;  %v43_v8 = vld [vmem:[%s805_s1 + $0x70] sm:$0xff]  ;;  %v44_v9 = vld [vmem:[%s805_s1 + $0x78] sm:$0xff]  ;;  %s313_s1 = sshll.u32 %s581_s13, 4  ;;  %s314_s1 = int_to_ptr.vmem [resolvable:$true] %s313_s1 }
  0x1d   :  { %523 = vmatprep.subr.bf16.mxu1 %v578_v3  ;;  %v545_v5 = vpack.c.bf16 %v223_v2, %v222_v1  ;;  %v500_v11 = vpack.c.bf16 %v44_v9, %v43_v8  ;;  %v321_v17 = vld [vmem:[%s808_s4] ss:$0 sm:$0xff]  ;;  %s554_s14 = scalar_lea.vmem %s314_s1, 128  ;;  %p559_p1 = scmp.lt.s32.totalorder %s314_s1, %s314_s1 }
  0x1e   :  { %p555_p0 = scmp.ne.s32.totalorder %s314_s1, %s554_s14  ;;  %p560_p2 = scmp.lt.s32.totalorder %s554_s14, %s554_s14 }
  0x20   :  { %525 = vmatpush3.bf16.msra.mxu1 %v524_v36  ;;  %p561_p3 = por %p560_p2, %p559_p1 }
  0x21   :  { %526 = vmatprep.subr.bf16.mxu1 %v578_v3 }
  0x22   :  { %489 = vmatpush3.bf16.xpose.msra.mxu0 %v488_v39  ;;  %p562_p4 = pnand %p561_p3, %p555_p0 }
  0x23   :  { %441 = vmatmul.mubr.f32.vlgmr.msra.gmra.mrb[0].mxu1 %v27_v40  ;;  %490 = vmatprep.subr.bf16.mxu0 %v578_v3 }
  0x24   :  { %528 = vmatpush3.bf16.msra.mxu1 %v527_v41  ;;  %475 = vmatprep.mubr.msk.f32.mxu1 %vm579_vm0, %v580_v6  ;;  %v224_v6 = vld [vmem:[%s807_s3 + $0x70] sm:$0xff] }
  0x25   :  { %529 = vmatprep.subr.bf16.mxu1 %v578_v3  ;;  %v548_v10 = vpack.c.bf16 %v225_v7, %v224_v6 }
  0x28   :  { %531 = vmatpush3.bf16.msra.mxu1 %v530_v46 }
  0x29   :  { %532 = vmatprep.subr.bf16.mxu1 %v578_v3 }
  0x2a   :  { %492 = vmatpush3.bf16.xpose.msra.mxu0 %v491_v49 }
  0x2b   :  { %493 = vmatprep.subr.bf16.mxu0 %v578_v3 }
  0x2c   :  { %534 = vmatpush3.bf16.msra.mxu1 %v533_v50 }
  0x2d   :  { %535 = vmatprep.subr.bf16.mxu1 %v578_v3 }
  0x30   :  { %537 = vmatpush3.bf16.msra.mxu1 %v536_v55 }
  0x31   :  { %538 = vmatprep.subr.bf16.mxu1 %v578_v3 }
  0x32   :  { %495 = vmatpush3.bf16.xpose.msra.mxu0 %v494_v58 }
  0x33   :  { %496 = vmatprep.subr.bf16.mxu0 %v578_v3 }
  0x34   :  { %540 = vmatpush3.bf16.msra.mxu1 %v539_v59 }
  0x35   :  { %541 = vmatprep.subr.bf16.mxu1 %v578_v3 }
  0x38   :  { %543 = vmatpush3.bf16.msra.mxu1 %v542_v0 }
  0x39   :  { %544 = vmatprep.subr.bf16.mxu1 %v578_v3 }
  0x3a   :  { %498 = vmatpush3.bf16.xpose.msra.mxu0 %v497_v4 }
  0x3b   :  { %499 = vmatprep.subr.bf16.mxu0 %v578_v3 }
  0x3c   :  { %546 = vmatpush3.bf16.msra.mxu1 %v545_v5 }
  0x3d   :  { %547 = vmatprep.subr.bf16.mxu1 %v578_v3 }
  0x40   :  { %549 = vmatpush3.bf16.msra.mxu1 %v548_v10 }
  0x42   :  { %501 = vmatpush3.bf16.xpose.msra.mxu0 %v500_v11 }
  0x49   :  { %406 = vmatmul.mubr.f32.vlgmr.msra.gmra.mrb[0].mxu0 %v27_v40 }
  0xf6   :  { %v200_v12 = vpop.f32.mrb[0].mxu1 }
  0xf7   :  { %v442_v13 = vpop.f32.mrb[1].mxu1  ;;  %476 = vmatmul.mubr.f32.vlgmr.msra.gmra.mrb[2].mxu1 %v200_v12 }
 0x11c   :  { %v111_v14 = vpop.f32.mrb[0].mxu0 }
 0x11d   :  { %v407_v15 = vpop.f32.mrb[1].mxu0 }
 0x1ca   :  { %v292_v16 = vpop.f32.mrb[2].mxu1 }
 0x1cb   :  { %v297_v18 = vadd.f32 %v292_v16, %v111_v14  ;;  %v477_v19 = vpop.f32.mrb[3].mxu1 }
 0x1cd   :  { %v305_v20 = vadd.f32 %v321_v17, %v297_v18 }
 0x1cf   :  { %306 = vst [vmem:[#allocation4] sm:$0xff] %v305_v20 }
 0x1d0   :  { %565 = shalt.err (!%p562_p4)
}
 0x1d1   :  { %s566_s17 = scalar_lea.hbm %s809_s5, 128 }
 0x1d2   :  { %p567_p5 = scmp.ne.s32.totalorder %s809_s5, %s566_s17  ;;  %p570_p6 = scmp.lt.u32.totalorder %s566_s17, %s809_s5 }
 0x1d4   :  { %p572_p7 = pnand %p570_p6, %p567_p5 }
 0x1d6   :  { %575 = shalt.err (!%p572_p7)
}
 0x1d7   :  { %316 = dma.vmem_to_hbm [thread:$0]  %s314_s1, 128, %s809_s5, [#allocation5]  }
 0x1d8   :  { %576 = dma.done.wait [#allocation5], 128  }
 0x1d9   :  { %577 = vsyncadd [#allocation5], 4294967168 }
 0x1da   :  { %320 = vsyncpa [#allocation5], 1 }

</bundles_post_ra>
